<compile_context>
chip_gen: v7x
topology: tpu7x:2x2x1
jax: 0.10.0
libtpu: 0.0.40
codegen_flags: <defaults>
</compile_context>

<pallas_src>
import jax
import jax.numpy as jnp
from jax.experimental import pallas as pl
from jax.experimental.pallas import tpu as pltpu


def _round_up(x: int, m: int) -> int:
    return ((x + m - 1) // m) * m


def _cdiv(a: int, b: int) -> int:
    return (a + b - 1) // b


def linear_kernel(w_ref, b_ref, x_ref, o_ref):
    """w_ref: SMEM (D,), b_ref: SMEM (1,), x_ref: VMEM (D, TILE_B), o_ref: VMEM (1, TILE_B)."""
    d_features = x_ref.shape[0]                       # static (3)
    # Bias broadcast hoisted once; then D statically-unrolled VPU multiply-adds.
    acc = jnp.full(o_ref.shape, b_ref[0], dtype=jnp.float32)
    for d in range(d_features):
        acc = acc + w_ref[d] * x_ref[pl.ds(d, 1), :]  # (1, TILE_B) lane-dense FMA
    o_ref[...] = acc


def simple_model_forward(x, w, b, *, tile_cap: int = 131072,
                         fast_path_threshold: int = 4096,
                         force_pallas: bool = False):
    """Forward pass of nn.Linear(D, 1).

    x: (B, D) f32 (PyTorch Linear input layout)
    w: (D,)   f32 (flattened torch weight of shape (1, D))
    b: (1,)   f32
    returns (B, 1) f32
    """
    B, D = x.shape

    # Small-batch fast path: kernel launch + relayout overhead dwarfs the math there.
    if (not force_pallas) and B <= fast_path_threshold:
        return x @ w.reshape(D, 1) + b

    # ---- tiling -------------------------------------------------------------
    # Pad B only to 128-lane granularity (not to a whole tile), then pick a step
    # count and derive the tile from it so padding waste stays < 128 lanes/step.
    padded_128 = _round_up(max(B, 1), 128)
    n_steps = max(_cdiv(padded_128, tile_cap), 1)
    if padded_128 >= 256:
        n_steps = max(n_steps, 2)        # let the parallel grid span both v7x TCs
    tile = _round_up(_cdiv(padded_128, n_steps), 128)
    padded_b = tile * n_steps

    # Feature-major lane-dense slab (D, padded_B); pad region is sliced off below.
    # TODO(synk): if the caller can provide x feature-major (D, B), this transpose
    # (one extra HBM pass over x) disappears entirely.
    x_t = jnp.pad(x.T, ((0, 0), (0, padded_b - B)))

    out = pl.pallas_call(
        linear_kernel,
        out_shape=jax.ShapeDtypeStruct((1, padded_b), jnp.float32),
        grid=(n_steps,),
        in_specs=[
            pl.BlockSpec(memory_space=pltpu.MemorySpace.SMEM),   # w: (D,) scalars
            pl.BlockSpec(memory_space=pltpu.MemorySpace.SMEM),   # b: (1,) scalar
            pl.BlockSpec((D, tile), lambda i: (0, i)),           # x: (D, TILE_B) VMEM tile
        ],
        out_specs=pl.BlockSpec((1, tile), lambda i: (0, i)),     # lane-dense output tile
        compiler_params=pltpu.CompilerParams(
            dimension_semantics=("parallel",),
            # Footprint @ tile_cap: 2 bufs * (8+8 sublanes) * tile * 4 B ~= 16 MiB.
            vmem_limit_bytes=48 * 1024 * 1024,
        ),
    )(w, b, x_t)

    return out[0, :B].reshape(B, 1)


def init_params(key, input_dim=3):
    # Deterministic init mirroring torch.nn.Linear default: U(-1/sqrt(in), 1/sqrt(in)).
    kw, kb = jax.random.split(key)
    bound = 1.0 / jnp.sqrt(jnp.float32(input_dim))
    w = jax.random.uniform(kw, (input_dim,), jnp.float32, -bound, bound)  # flattened (1, D)
    b = jax.random.uniform(kb, (1,), jnp.float32, -bound, bound)
    return w, b


if __name__ == "__main__":
    key = jax.random.PRNGKey(0)
    k_x, k_x2, k_p = jax.random.split(key, 3)

    input_dim = 3
    w, b = init_params(k_p, input_dim)

    # Primary small-shape check: force the Pallas path so the kernel actually runs.
    batch = 8
    x = jax.random.normal(k_x, (batch, input_dim), jnp.float32)
    out = simple_model_forward(x, w, b, force_pallas=True)
    jax.block_until_ready(out)
    ref = x @ w.reshape(input_dim, 1) + b
    assert out.shape == (batch, 1)
    assert jnp.allclose(out, ref, atol=1e-5), "mismatch vs reference (batch=8, pallas)"

    # Secondary check: batch not a multiple of 128 exercises padding + multi-step grid.
    batch2 = 300
    x2 = jax.random.normal(k_x2, (batch2, input_dim), jnp.float32)
    out2 = simple_model_forward(x2, w, b, force_pallas=True)
    jax.block_until_ready(out2)
    ref2 = x2 @ w.reshape(input_dim, 1) + b
    assert out2.shape == (batch2, 1)
    assert jnp.allclose(out2, ref2, atol=1e-5), "mismatch vs reference (batch=300, pallas)"

    # Fast-path (plain XLA) check at tiny batch, matching the module's intended use.
    out3 = simple_model_forward(x, w, b)
    jax.block_until_ready(out3)
    assert jnp.allclose(out3, ref, atol=1e-5), "mismatch vs reference (fast path)"

    print("KERNEL_OK")
</pallas_src>

<mosaic_0001>
module attributes {stable_mosaic.version = 11 : i64} {
  func.func @linear_kernel(%arg0: i32, %arg1: memref<3xf32, #tpu.memory_space<smem>>, %arg2: memref<1xf32, #tpu.memory_space<smem>>, %arg3: memref<3x128xf32, #tpu.memory_space<vmem>>, %arg4: memref<1x128xf32, #tpu.memory_space<vmem>>) attributes {dimension_semantics = [#tpu.dimension_semantics<parallel>], iteration_bounds = array<i64: 1>, scalar_prefetch = 0 : i64, scratch_operands = 0 : i64, tpu.core_type = #tpu.core_type<tc>, window_params = [{transform_indices = @transform_0, window_bounds = array<i64: 3>}, {transform_indices = @transform_1, window_bounds = array<i64: 1>}, {transform_indices = @transform_2, window_bounds = array<i64: 3, 128>}, {transform_indices = @transform_3, window_bounds = array<i64: 1, 128>}]} {
    %c0 = arith.constant 0 : index
    %0 = memref.load %arg2[%c0] : memref<1xf32, #tpu.memory_space<smem>>
    %1 = vector.broadcast %0 : f32 to vector<1x128xf32>
    %c0_0 = arith.constant 0 : index
    %2 = memref.load %arg1[%c0_0] : memref<3xf32, #tpu.memory_space<smem>>
    %c0_1 = arith.constant 0 : index
    %c0_2 = arith.constant 0 : index
    %3 = vector.load %arg3[%c0_1, %c0_2] : memref<3x128xf32, #tpu.memory_space<vmem>>, vector<1x128xf32>
    %4 = vector.broadcast %2 : f32 to vector<1x128xf32>
    %5 = arith.mulf %4, %3 : vector<1x128xf32>
    %6 = arith.addf %1, %5 : vector<1x128xf32>
    %c1 = arith.constant 1 : index
    %7 = memref.load %arg1[%c1] : memref<3xf32, #tpu.memory_space<smem>>
    %c1_3 = arith.constant 1 : index
    %c0_4 = arith.constant 0 : index
    %8 = vector.load %arg3[%c1_3, %c0_4] : memref<3x128xf32, #tpu.memory_space<vmem>>, vector<1x128xf32>
    %9 = vector.broadcast %7 : f32 to vector<1x128xf32>
    %10 = arith.mulf %9, %8 : vector<1x128xf32>
    %11 = arith.addf %6, %10 : vector<1x128xf32>
    %c2 = arith.constant 2 : index
    %12 = memref.load %arg1[%c2] : memref<3xf32, #tpu.memory_space<smem>>
    %c2_5 = arith.constant 2 : index
    %c0_6 = arith.constant 0 : index
    %13 = vector.load %arg3[%c2_5, %c0_6] : memref<3x128xf32, #tpu.memory_space<vmem>>, vector<1x128xf32>
    %14 = vector.broadcast %12 : f32 to vector<1x128xf32>
    %15 = arith.mulf %14, %13 : vector<1x128xf32>
    %16 = arith.addf %11, %15 : vector<1x128xf32>
    %c0_7 = arith.constant 0 : index
    %c0_8 = arith.constant 0 : index
    %17 = vector.load %arg4[%c0_7, %c0_8] : memref<1x128xf32, #tpu.memory_space<vmem>>, vector<1x128xf32>
    tpu.vector_store %arg4[%c0_7, %c0_8], %16 {strides = array<i32>} : memref<1x128xf32, #tpu.memory_space<vmem>>, vector<1x128xf32>,
    return
  }
  func.func @transform_0(%arg0: i32) -> i32 {
    %c0_i32 = arith.constant 0 : i32
    %c0_i32_0 = arith.constant 0 : i32
    return %c0_i32 : i32
  }
  func.func @transform_1(%arg0: i32) -> i32 {
    %c0_i32 = arith.constant 0 : i32
    %c0_i32_0 = arith.constant 0 : i32
    return %c0_i32 : i32
  }
  func.func @transform_2(%arg0: i32) -> (i32, i32) {
    %c0_i32 = arith.constant 0 : i32
    %c0_i32_0 = arith.constant 0 : i32
    return %c0_i32, %arg0 : i32, i32
  }
  func.func @transform_3(%arg0: i32) -> (i32, i32) {
    %c0_i32 = arith.constant 0 : i32
    %c0_i32_0 = arith.constant 0 : i32
    return %c0_i32, %arg0 : i32, i32
  }
}

</mosaic_0001>

<bundles_post_ra>
// kernel: tpu_custom_call.1
= control target key start
LH: loop header
LB: loop body
LE: loop exit
PB: predicated region body
PF: predicated region fallthrough
CT: control target
= control target key end

     0   :  { %9 = vsyncpa [#allocation5], 0  ;;  %s153_s0 = inlined_call_operand.vmem [shape: f32[3], index: 0, kind: input, shape index: {}]   ;;  %s154_s1 = inlined_call_operand.<no memory space> [shape: f32[1], index: 1, kind: input, shape index: {}]   ;;  %s155_s2 = inlined_call_operand.vmem [shape: f32[3,128], index: 2, kind: input, shape index: {}]   ;;  %s156_s3 = inlined_call_operand.hbm [shape: f32[1,128], index: 3, kind: output, shape index: {}]  }
   0x1   :  { %10 = vsyncpa [#allocation4], 0  ;;  %s17_s14 = sshll.u32 %s153_s0, 4  ;;  %s18_s14 = int_to_ptr.vmem [resolvable:$true] %s17_s14 }
   0x2   :  { %s66_s15 = scalar_lea.vmem %s18_s14, 16  ;;  %p71_p1 = scmp.lt.s32.totalorder %s18_s14, %s18_s14 }
   0x3   :  { %p67_p0 = scmp.ne.s32.totalorder %s18_s14, %s66_s15  ;;  %p72_p2 = scmp.lt.s32.totalorder %s66_s15, %s66_s15 }
   0x5   :  { %p73_p3 = por %p72_p2, %p71_p1 }
   0x7   :  { %p74_p4 = pnand %p73_p3, %p67_p0 }
   0x9   :  { %77 = shalt.err (!%p74_p4)
}
   0xa   :  { %s104_s16 = smov [#allocation3]  }
   0xb   :  { %20 = dma.vmem_to_smem %s18_s14, 16, %s104_s16, [#allocation5]  }
   0xc   :  { %100 = dma.done.wait [#allocation5], 16  }
   0xd   :  { %101 = vsyncadd [#allocation5], 4294967280 }
   0xe   :  { %28 = sfence }
   0xf   :  { %s31_s17 = sld [smem:[#allocation3]]  ;;  %s62_s18 = sld [smem:[#allocation3 + $0x1]]  ;;  %v32_v0 = vld [vmem:[%s155_s2] sm:$0x1]  ;;  %v37_v1 = vld [vmem:[%s155_s2 + $0x1] sm:$0x1]  ;;  %v30_v2 = vstv %s154_s1 }
  0x10   :  { %s63_s19 = sld [smem:[#allocation3 + $0x2]]  ;;  %v42_v5 = vld [vmem:[%s155_s2 + $0x2] sm:$0x1]  ;;  %s105_s27 = smov [#allocation6]  }
  0x11   :  { %s53_s28 = sshll.u32 %s105_s27, 4  ;;  %s54_s28 = int_to_ptr.vmem [resolvable:$true] %s53_s28 }
  0x12   :  { %s78_s29 = scalar_lea.vmem %s54_s28, 16  ;;  %s82_s1 = scalar_lea.vmem %s54_s28, 32 }
  0x13   :  { %p79_p5 = scmp.ne.s32.totalorder %s54_s28, %s78_s29  ;;  %p83_p6 = scmp.lt.s32.totalorder %s54_s28, %s54_s28 }
  0x14   :  { %p84_p7 = scmp.lt.s32.totalorder %s82_s1, %s78_s29 }
  0x15   :  { %v33_v3 = vstv %s31_s17  ;;  %v38_v4 = vstv %s62_s18 }
  0x16   :  { %v34_v6 = vmul.f32 %v33_v3, %v32_v0  ;;  %v39_v7 = vmul.f32 %v38_v4, %v37_v1  ;;  %v43_v8 = vstv %s63_s19  ;;  %p85_p8 = por %p84_p7, %p83_p6 }
  0x17   :  { %v44_v10 = vmul.f32 %v43_v8, %v42_v5 }
  0x18   :  { %v35_v9 = vadd.f32 %v34_v6, %v30_v2  ;;  %p86_p9 = pnand %p85_p8, %p79_p5 }
  0x1a   :  { %v40_v11 = vadd.f32 %v39_v7, %v35_v9 }
  0x1c   :  { %v45_v12 = vadd.f32 %v44_v10, %v40_v11 }
  0x1e   :  { %46 = vst [vmem:[#allocation6] sm:$0x1] %v45_v12 }
  0x1f   :  { %89 = shalt.err (!%p86_p9)
}
  0x20   :  { %s90_s4 = scalar_lea.hbm %s156_s3, 16 }
  0x21   :  { %p91_p10 = scmp.ne.s32.totalorder %s156_s3, %s90_s4  ;;  %p94_p11 = scmp.lt.u32.totalorder %s90_s4, %s156_s3 }
  0x23   :  { %p96_p12 = pnand %p94_p11, %p91_p10 }
  0x25   :  { %99 = shalt.err (!%p96_p12)
}
  0x26   :  { %56 = dma.vmem_to_hbm [thread:$0]  %s54_s28, 16, %s156_s3, [#allocation4]  }
  0x27   :  { %102 = dma.done.wait [#allocation4], 16  }
  0x28   :  { %103 = vsyncadd [#allocation4], 4294967280 }
  0x29   :  { %60 = vsyncpa [#allocation4], 1 }
  0x2a   :  { %61 = vsyncpa [#allocation5], 1 }

</bundles_post_ra>
